<compile_context>
chip_gen: v6e
topology: v6e:2x2x1
jax: 0.10.0
libtpu: 0.0.40
codegen_flags: <defaults>
</compile_context>

<pallas_src>
import functools

import jax
import jax.numpy as jnp
from jax.experimental import pallas as pl
from jax.experimental.pallas import tpu as pltpu

EPS = 1e-5                        # PyTorch BatchNorm1d default eps
LANE = 128
_VMEM_LIMIT = 32 * 1024 * 1024    # explicit scoped-VMEM cap (safe on v5e/v6e/v7x)
_VMEM_BUDGET = 24 * 1024 * 1024   # per-step working-set target under that cap


def _round_up(a, b):
    return (a + b - 1) // b * b


# ---------------------------------------------------------------------------
# shared tile body: assemble the padded window and run the conv contraction(s)
# ---------------------------------------------------------------------------
def _window_conv(xc_ref, halo_ref, wflat_ref, wd_ref, win_ref, *,
                 K, P, TL, C0, Cin, Cin_p, has_downsample, with_residual):
    ti = pl.program_id(2)

    # Channel-pad rows [Cin, Cin_p) meet zero weight columns, but must hold finite
    # values (NaN * 0 = NaN), so zero them once per (n, L-outer) row.
    if Cin_p > Cin:
        @pl.when(ti == 0)
        def _():
            win_ref[Cin:Cin_p, :] = jnp.zeros(
                (Cin_p - Cin, win_ref.shape[1]), win_ref.dtype)

    # Contiguous padded window:  [left halo | centre tile | right halo],
    # centre lane-aligned at column C0 (a multiple of 128).
    win_ref[0:Cin, C0:C0 + TL] = xc_ref[0]
    if P > 0:
        win_ref[0:Cin, C0 - P:C0] = halo_ref[0, 0, :, 0:P]
        win_ref[0:Cin, C0 + TL:C0 + TL + P] = halo_ref[0, 0, :, P:2 * P]

    # K shifted taps stacked on 8-aligned sublane blocks -> ONE MXU contraction
    # of depth K*Cin_p.  Tap loads are static shifted VMEM loads; the middle tap
    # (k == P) is fully lane-aligned and doubles as the residual-path input.
    taps = [win_ref[:, C0 - P + k:C0 - P + k + TL] for k in range(K)]
    patches = jnp.concatenate(taps, axis=0) if K > 1 else taps[0]
    y = jnp.dot(wflat_ref[...], patches, preferred_element_type=jnp.float32)

    r = None
    if with_residual:
        if has_downsample:
            r = jnp.dot(wd_ref[...], taps[P], preferred_element_type=jnp.float32)
        else:
            r = xc_ref[0].astype(jnp.float32)      # identity residual (Cin == Cout)
    return y, r


# ---------------------------------------------------------------------------
# pass 1: per-channel [sum, sum_sq] of both conv outputs (BatchNorm batch stats)
# ---------------------------------------------------------------------------
def _stats_kernel(*refs, K, P, TL, C0, Cin, Cin_p, has_downsample,
                  nTi, nLt, tail_valid, needs_mask):
    if P > 0:
        xc_ref, halo_ref, wflat_ref, wd_ref, stats_ref, win_ref = refs
    else:
        xc_ref, wflat_ref, wd_ref, stats_ref, win_ref = refs
        halo_ref = None
    to = pl.program_id(1)
    ti = pl.program_id(2)

    y, r = _window_conv(xc_ref, halo_ref, wflat_ref, wd_ref, win_ref,
                        K=K, P=P, TL=TL, C0=C0, Cin=Cin, Cin_p=Cin_p,
                        has_downsample=has_downsample,
                        with_residual=has_downsample)

    if needs_mask:   # L was rounded up to a multiple of 128: drop the pad columns.
        tt = to * nTi + ti
        valid = jnp.where(tt == nLt - 1, tail_valid, TL)
        keep = jax.lax.broadcasted_iota(jnp.int32, y.shape, 1) < valid
        y = jnp.where(keep, y, 0.0)
        if has_downsample:
            r = jnp.where(keep, r, 0.0)

    cols = [jnp.sum(y, axis=1, keepdims=True),
            jnp.sum(y * y, axis=1, keepdims=True)]
    if has_downsample:
        cols += [jnp.sum(r, axis=1, keepdims=True),
                 jnp.sum(r * r, axis=1, keepdims=True)]
    else:
        z = jnp.zeros_like(cols[0])
        cols += [z, z]
    part = jnp.concatenate(cols, axis=1)            # (Cout, 4)

    @pl.when(ti == 0)
    def _():
        stats_ref[0, 0] = jnp.zeros_like(stats_ref[0, 0])
    stats_ref[0, 0] = stats_ref[0, 0] + part


# ---------------------------------------------------------------------------
# pass 2: recompute conv tiles, apply folded BN affine, ReLU, residual add
# ---------------------------------------------------------------------------
def _apply_kernel(*refs, K, P, TL, C0, Cin, Cin_p, has_downsample):
    if P > 0:
        xc_ref, halo_ref, wflat_ref, wd_ref, coef_ref, out_ref, win_ref = refs
    else:
        xc_ref, wflat_ref, wd_ref, coef_ref, out_ref, win_ref = refs
        halo_ref = None

    y, r = _window_conv(xc_ref, halo_ref, wflat_ref, wd_ref, win_ref,
                        K=K, P=P, TL=TL, C0=C0, Cin=Cin, Cin_p=Cin_p,
                        has_downsample=has_downsample, with_residual=True)

    coef = coef_ref[...]                            # (Cout, 4) float32
    out = jnp.maximum(y * coef[:, 0:1] + coef[:, 1:2], 0.0)      # BN + ReLU
    if has_downsample:
        out = out + (r * coef[:, 2:3] + coef[:, 3:4])            # BN (residual)
    else:
        out = out + r                                            # identity residual
    out_ref[0] = out.astype(out_ref.dtype)


# ---------------------------------------------------------------------------
# wrapper
# ---------------------------------------------------------------------------
def decoder_block(x, params, kernel_size, padding, *, block_l=2048, matmul_dtype=None):
    """DecoderBlock forward (training-mode BatchNorm: batch statistics).

    Conv biases ('b'/'bd') are accepted but ignored: train-mode BatchNorm subtracts
    the batch mean, which cancels any constant per-channel bias exactly.
    Pass matmul_dtype=jnp.bfloat16 (recommended on v6e/v7x) to halve operand HBM
    traffic; accumulation, statistics and the BN affine stay float32.
    """
    N, Cin, L = x.shape
    K, P = int(kernel_size), int(padding)
    if K != 2 * P + 1:
        raise ValueError("residual add requires a 'same' conv: kernel_size == 2*padding + 1")
    if P > LANE:
        raise NotImplementedError("padding > 128 not supported")
    w = params['w']
    Cout = w.shape[0]
    has_downsample = 'wd' in params
    if not has_downsample and Cin != Cout:
        raise ValueError("identity residual requires in_channels == out_channels")
    out_dtype = x.dtype
    in_dtype = jnp.dtype(matmul_dtype) if matmul_dtype is not None else x.dtype

    Cin_p = _round_up(Cin, 8)                 # sublane-aligned channel blocks

    # ---- tile selection: lane-dense (multiple-of-128) L tiles, VMEM-bounded ----
    Lp = _round_up(L, LANE)
    in_item = jnp.dtype(in_dtype).itemsize
    out_item = jnp.dtype(out_dtype).itemsize
    per_col = ((2 * Cin + Cin_p + K * Cin_p) * in_item
               + 2 * Cout * out_item + 3 * Cout * 4)
    fixed = Cout * (K * Cin_p + Cin_p + 8) * 4
    budget = max(_VMEM_BUDGET - fixed, 1 << 20)
    start = max(LANE, (min(block_l, Lp) // LANE) * LANE)
    TL = LANE
    for cand in range(start, LANE - 1, -LANE):
        if Lp % cand == 0 and cand * per_col <= budget:
            TL = cand
            break
    nLt = Lp // TL
    nTo = 2 if nLt % 2 == 0 else 1            # second "parallel" axis (v7x megacore)
    nTi = nLt // nTo
    grid = (N, nTo, nTi)
    C0 = LANE if P > 0 else 0                 # lane-aligned centre offset in the window
    TLW = C0 + TL + (LANE if P > 0 else 0)
    # TODO(synk): when Cin/Cout are tiny, batch several samples per grid step so the
    # MXU operands use more sublanes and per-step overhead amortises better.

    # ---- inputs: no full padded copy of x (pad only when L isn't lane-aligned) ----
    xw = x if Lp == L else jnp.pad(x, ((0, 0), (0, 0), (0, Lp - L)))
    xw = xw.astype(in_dtype)

    if P > 0:
        # Tiny halo side-array (N, nLt, Cin, 2P): left/right P columns of each tile's
        # neighbours (zeros at the row edges).  ~2P/TL of |x| -> negligible traffic.
        xr = xw.reshape(N, Cin, nLt, TL)
        head = xr[:, :, :, :P]
        tail = xr[:, :, :, TL - P:]
        zero = jnp.zeros((N, Cin, 1, P), xw.dtype)
        left = jnp.concatenate([zero, tail[:, :, :nLt - 1, :]], axis=2)
        right = jnp.concatenate([head[:, :, 1:, :], zero], axis=2)
        halo = jnp.transpose(jnp.concatenate([left, right], axis=3), (0, 2, 1, 3))

    # ---- weights: tap-major rows (k*Cin_p + c), channel-padded with zero columns ----
    wflat = (jnp.zeros((Cout, K, Cin_p), jnp.float32)
             .at[:, :, :Cin].set(jnp.transpose(w, (0, 2, 1)).astype(jnp.float32))
             .reshape(Cout, K * Cin_p).astype(in_dtype))
    if has_downsample:
        wd2 = params['wd']
        wd2 = wd2[:, :, 0] if wd2.ndim == 3 else wd2
        wd = (jnp.zeros((Cout, Cin_p), jnp.float32)
              .at[:, :Cin].set(wd2.astype(jnp.float32)).astype(in_dtype))
    else:
        wd = jnp.zeros((Cout, Cin_p), in_dtype)

    # ---- BlockSpecs (all auto-pipelined; constant-index blocks stay resident) ----
    x_spec = pl.BlockSpec((1, Cin, TL), lambda n, to, ti: (n, 0, to * nTi + ti))
    wflat_spec = pl.BlockSpec((Cout, K * Cin_p), lambda n, to, ti: (0, 0))
    wd_spec = pl.BlockSpec((Cout, Cin_p), lambda n, to, ti: (0, 0))
    coef_spec = pl.BlockSpec((Cout, 4), lambda n, to, ti: (0, 0))
    win_scratch = pltpu.VMEM((Cin_p, TLW), xw.dtype)

    if P > 0:
        halo_spec = pl.BlockSpec((1, 1, Cin, 2 * P),
                                 lambda n, to, ti: (n, to * nTi + ti, 0, 0))
        in_specs = [x_spec, halo_spec, wflat_spec, wd_spec]
        in_args = (xw, halo, wflat, wd)
    else:
        in_specs = [x_spec, wflat_spec, wd_spec]
        in_args = (xw, wflat, wd)

    common = dict(K=K, P=P, TL=TL, C0=C0, Cin=Cin, Cin_p=Cin_p,
                  has_downsample=has_downsample)

    # ----------------- pass 1: BatchNorm batch statistics -----------------
    stats = pl.pallas_call(
        functools.partial(_stats_kernel, nTi=nTi, nLt=nLt,
                          tail_valid=L - (nLt - 1) * TL, needs_mask=(Lp != L),
                          **common),
        out_shape=jax.ShapeDtypeStruct((N, nTo, Cout, 4), jnp.float32),
        grid_spec=pltpu.PrefetchScalarGridSpec(
            num_scalar_prefetch=0,
            grid=grid,
            in_specs=in_specs,
            out_specs=pl.BlockSpec((1, 1, Cout, 4), lambda n, to, ti: (n, to, 0, 0)),
            scratch_shapes=[win_scratch],
        ),
        compiler_params=pltpu.CompilerParams(
            dimension_semantics=("parallel", "parallel", "arbitrary"),
            vmem_limit_bytes=_VMEM_LIMIT),
    )(*in_args)

    # -------- fold BN into a per-channel affine y*A + B (tiny O(Cout) glue) --------
    # TODO(synk): switch to a Welford-style merge of per-tile (count, mean, M2) if
    # E[x^2]-E[x]^2 cancellation ever matters for very large N*L / large means.
    s = jnp.sum(stats, axis=(0, 1))                 # (Cout, 4): S_y, SS_y, S_r, SS_r
    cnt = jnp.float32(N * L)
    mean_y = s[:, 0] / cnt
    var_y = jnp.maximum(s[:, 1] / cnt - mean_y * mean_y, 0.0)
    a_y = params['gamma'].reshape(-1).astype(jnp.float32) * jax.lax.rsqrt(var_y + EPS)
    b_y = params['beta'].reshape(-1).astype(jnp.float32) - mean_y * a_y
    if has_downsample:
        mean_r = s[:, 2] / cnt
        var_r = jnp.maximum(s[:, 3] / cnt - mean_r * mean_r, 0.0)
        a_r = params['gammad'].reshape(-1).astype(jnp.float32) * jax.lax.rsqrt(var_r + EPS)
        b_r = params['betad'].reshape(-1).astype(jnp.float32) - mean_r * a_r
    else:
        a_r = jnp.ones((Cout,), jnp.float32)
        b_r = jnp.zeros((Cout,), jnp.float32)
    coef = jnp.stack([a_y, b_y, a_r, b_r], axis=1)  # (Cout, 4) float32

    # ----------------- pass 2: normalize + ReLU + residual add -----------------
    # The inner L axis stays a true sequential loop only when channel-pad rows exist
    # (their once-per-row zeroing is the only cross-step scratch dependency).
    sem2 = ("parallel", "parallel", "parallel" if Cin_p == Cin else "arbitrary")
    out_full = pl.pallas_call(
        functools.partial(_apply_kernel, **common),
        out_shape=jax.ShapeDtypeStruct((N, Cout, Lp), out_dtype),
        grid_spec=pltpu.PrefetchScalarGridSpec(
            num_scalar_prefetch=0,
            grid=grid,
            in_specs=in_specs + [coef_spec],
            out_specs=pl.BlockSpec((1, Cout, TL),
                                   lambda n, to, ti: (n, 0, to * nTi + ti)),
            scratch_shapes=[win_scratch],
        ),
        compiler_params=pltpu.CompilerParams(
            dimension_semantics=sem2,
            vmem_limit_bytes=_VMEM_LIMIT),
    )(*in_args, coef)

    return out_full if Lp == L else out_full[:, :, :L]


# --------------------- pure-JAX reference (for checking) ---------------------
def reference(x, p, K, pad):
    dn = ('NCH', 'OIH', 'NCH')
    conv = jax.lax.conv_general_dilated(
        x, p['w'], window_strides=(1,), padding=[(pad, pad)],
        dimension_numbers=dn) + p['b'][None, :, None]
    m = jnp.mean(conv, axis=(0, 2), keepdims=True)
    v = jnp.mean((conv - m) ** 2, axis=(0, 2), keepdims=True)
    out = (conv - m) / jnp.sqrt(v + EPS) * p['gamma'][None, :, None] + p['beta'][None, :, None]
    out = jnp.maximum(out, 0.0)
    if 'wd' in p:
        res = jax.lax.conv_general_dilated(
            x, p['wd'][:, :, None], window_strides=(1,), padding=[(0, 0)],
            dimension_numbers=dn) + p['bd'][None, :, None]
        rm = jnp.mean(res, axis=(0, 2), keepdims=True)
        rv = jnp.mean((res - rm) ** 2, axis=(0, 2), keepdims=True)
        res = (res - rm) / jnp.sqrt(rv + EPS) * p['gammad'][None, :, None] + p['betad'][None, :, None]
    else:
        res = x
    return out + res


if __name__ == "__main__":
    key = jax.random.PRNGKey(0)

    def make_params(k, Cin, Cout, K, downsample):
        ks = jax.random.split(k, 8)
        p = dict(
            w=0.1 * jax.random.normal(ks[0], (Cout, Cin, K), jnp.float32),
            b=0.1 * jax.random.normal(ks[1], (Cout,), jnp.float32),
            gamma=1.0 + 0.1 * jax.random.normal(ks[2], (Cout,), jnp.float32),
            beta=0.1 * jax.random.normal(ks[3], (Cout,), jnp.float32),
        )
        if downsample:
            p.update(
                wd=0.1 * jax.random.normal(ks[4], (Cout, Cin), jnp.float32),
                bd=0.1 * jax.random.normal(ks[5], (Cout,), jnp.float32),
                gammad=1.0 + 0.1 * jax.random.normal(ks[6], (Cout,), jnp.float32),
                betad=0.1 * jax.random.normal(ks[7], (Cout,), jnp.float32),
            )
        return p

    k1, k2, k3, k4, k5, k6 = jax.random.split(key, 6)
    K, P = 3, 1

    # 1) small shape (Cin != Cout -> downsample branch); L < 128 exercises the
    #    lane-padding + stats-masking path and the channel-pad (Cin=4 -> 8) rows.
    N, Cin, Cout, L = 2, 4, 8, 16
    x = jax.random.normal(k1, (N, Cin, L), jnp.float32)
    params = make_params(k2, Cin, Cout, K, downsample=True)
    out = jax.block_until_ready(decoder_block(x, params, K, P))
    assert out.shape == (N, Cout, L)
    assert jnp.allclose(out, reference(x, params, K, P), atol=5e-4, rtol=5e-4), \
        "mismatch (downsample, masked tail)"

    # 2) multi-tile grid: halo strips from neighbouring tiles + split stats axis.
    N2, Cin2, Cout2, L2 = 2, 8, 16, 512
    x2 = jax.random.normal(k3, (N2, Cin2, L2), jnp.float32)
    params2 = make_params(k4, Cin2, Cout2, K, downsample=True)
    ref2 = reference(x2, params2, K, P)
    out2 = jax.block_until_ready(decoder_block(x2, params2, K, P, block_l=128))
    assert out2.shape == (N2, Cout2, L2)
    assert jnp.allclose(out2, ref2, atol=5e-4, rtol=5e-4), "mismatch (tiled)"

    # 3) identity residual (in_channels == out_channels -> no downsample branch).
    N3, C3, L3 = 2, 8, 256
    x3 = jax.random.normal(k5, (N3, C3, L3), jnp.float32)
    params3 = make_params(k6, C3, C3, K, downsample=False)
    out3 = jax.block_until_ready(decoder_block(x3, params3, K, P, block_l=128))
    assert out3.shape == (N3, C3, L3)
    assert jnp.allclose(out3, reference(x3, params3, K, P), atol=5e-4, rtol=5e-4), \
        "mismatch (identity residual)"

    # 4) bf16 operands (v6e/v7x bandwidth option); accumulation stays f32.
    out4 = jax.block_until_ready(
        decoder_block(x2, params2, K, P, block_l=128, matmul_dtype=jnp.bfloat16))
    assert jnp.allclose(out4, ref2, atol=5e-2, rtol=5e-2), "mismatch (bf16 operands)"

    print("KERNEL_OK")
</pallas_src>

<mosaic_0001>
module attributes {stable_mosaic.version = 11 : i64} {
  func.func @_stats_kernel(%arg0: i32, %arg1: i32, %arg2: i32, %arg3: memref<1x4x128xf32, #tpu.memory_space<vmem>>, %arg4: memref<1x1x4x2xf32, #tpu.memory_space<vmem>>, %arg5: memref<8x24xf32, #tpu.memory_space<vmem>>, %arg6: memref<8x8xf32, #tpu.memory_space<vmem>>, %arg7: memref<1x1x8x4xf32, #tpu.memory_space<vmem>>, %arg8: memref<8x384xf32, #tpu.memory_space<vmem>>) attributes {dimension_semantics = [#tpu.dimension_semantics<parallel>, #tpu.dimension_semantics<parallel>, #tpu.dimension_semantics<arbitrary>], iteration_bounds = array<i64: 2, 1, 1>, scalar_prefetch = 0 : i64, scratch_operands = 1 : i64, tpu.core_type = #tpu.core_type<tc>, window_params = [{transform_indices = @transform_0, window_bounds = array<i64: 1, 4, 128>}, {transform_indices = @transform_1, window_bounds = array<i64: 1, 1, 4, 2>}, {pipeline_mode = #tpu.pipeline_mode<synchronous>, transform_indices = @transform_2, window_bounds = array<i64: 8, 24>}, {pipeline_mode = #tpu.pipeline_mode<synchronous>, transform_indices = @transform_3, window_bounds = array<i64: 8, 8>}, {transform_indices = @transform_4, window_bounds = array<i64: 1, 1, 8, 4>}]} {
    %c0_i32 = arith.constant 0 : i32
    %0 = arith.cmpi eq, %arg2, %c0_i32 : i32
    %1 = arith.extui %0 : i1 to i32
    %c0_i32_0 = arith.constant 0 : i32
    %2 = arith.cmpi ne, %1, %c0_i32_0 : i32
    scf.if %2 {
      %cst_40 = arith.constant 0.000000e+00 : f32
      %51 = vector.broadcast %cst_40 : f32 to vector<4x384xf32>
      %c4 = arith.constant 4 : index
      %c0_41 = arith.constant 0 : index
      %52 = vector.load %arg8[%c4, %c0_41] : memref<8x384xf32, #tpu.memory_space<vmem>>, vector<4x384xf32>
      tpu.vector_store %arg8[%c4, %c0_41], %51 {strides = array<i32>} : memref<8x384xf32, #tpu.memory_space<vmem>>, vector<4x384xf32>,
    } else {
    }
    %c0 = arith.constant 0 : index
    %c0_1 = arith.constant 0 : index
    %c0_2 = arith.constant 0 : index
    %3 = vector.load %arg3[%c0, %c0_1, %c0_2] : memref<1x4x128xf32, #tpu.memory_space<vmem>>, vector<1x4x128xf32>
    %4 = vector.shape_cast %3 : vector<1x4x128xf32> to vector<4x128xf32>
    %c0_3 = arith.constant 0 : index
    %c128 = arith.constant 128 : index
    %5 = vector.load %arg8[%c0_3, %c128] : memref<8x384xf32, #tpu.memory_space<vmem>>, vector<4x128xf32>
    tpu.vector_store %arg8[%c0_3, %c128], %4 {strides = array<i32>} : memref<8x384xf32, #tpu.memory_space<vmem>>, vector<4x128xf32>,
    %c0_4 = arith.constant 0 : index
    %c0_5 = arith.constant 0 : index
    %c0_6 = arith.constant 0 : index
    %c0_7 = arith.constant 0 : index
    %6 = vector.load %arg4[%c0_4, %c0_5, %c0_6, %c0_7] : memref<1x1x4x2xf32, #tpu.memory_space<vmem>>, vector<1x1x4x1xf32>
    %7 = vector.shape_cast %6 : vector<1x1x4x1xf32> to vector<4x1xf32>
    %c0_8 = arith.constant 0 : index
    %c127 = arith.constant 127 : index
    %8 = vector.load %arg8[%c0_8, %c127] : memref<8x384xf32, #tpu.memory_space<vmem>>, vector<4x1xf32>
    tpu.vector_store %arg8[%c0_8, %c127], %7 {strides = array<i32>} : memref<8x384xf32, #tpu.memory_space<vmem>>, vector<4x1xf32>,
    %c0_9 = arith.constant 0 : index
    %c0_10 = arith.constant 0 : index
    %c0_11 = arith.constant 0 : index
    %c1 = arith.constant 1 : index
    %9 = vector.load %arg4[%c0_9, %c0_10, %c0_11, %c1] : memref<1x1x4x2xf32, #tpu.memory_space<vmem>>, vector<1x1x4x1xf32>
    %10 = vector.shape_cast %9 : vector<1x1x4x1xf32> to vector<4x1xf32>
    %c0_12 = arith.constant 0 : index
    %c256 = arith.constant 256 : index
    %11 = vector.load %arg8[%c0_12, %c256] : memref<8x384xf32, #tpu.memory_space<vmem>>, vector<4x1xf32>
    tpu.vector_store %arg8[%c0_12, %c256], %10 {strides = array<i32>} : memref<8x384xf32, #tpu.memory_space<vmem>>, vector<4x1xf32>,
    %c0_13 = arith.constant 0 : index
    %c127_14 = arith.constant 127 : index
    %12 = vector.load %arg8[%c0_13, %c127_14] : memref<8x384xf32, #tpu.memory_space<vmem>>, vector<8x128xf32>
    %c0_15 = arith.constant 0 : index
    %c128_16 = arith.constant 128 : index
    %13 = vector.load %arg8[%c0_15, %c128_16] : memref<8x384xf32, #tpu.memory_space<vmem>>, vector<8x128xf32>
    %c0_17 = arith.constant 0 : index
    %c129 = arith.constant 129 : index
    %14 = vector.load %arg8[%c0_17, %c129] : memref<8x384xf32, #tpu.memory_space<vmem>>, vector<8x128xf32>
    %15 = tpu.concatenate %12, %13, %14 in 0 : vector<8x128xf32>, vector<8x128xf32>, vector<8x128xf32> -> vector<24x128xf32>
    %c0_18 = arith.constant 0 : index
    %c0_19 = arith.constant 0 : index
    %16 = vector.load %arg5[%c0_18, %c0_19] : memref<8x24xf32, #tpu.memory_space<vmem>>, vector<8x24xf32>
    %cst = arith.constant dense<0.000000e+00> : vector<8x128xf32>
    %17 = tpu.matmul %16, %15, %cst {dimension_numbers = #tpu.dot_dimension_numbers<[1], [0], [0], [1], [0, 0, 1, 1], [], []>} : vector<8x24xf32>, vector<24x128xf32>, vector<8x128xf32> -> vector<8x128xf32>
    %c0_20 = arith.constant 0 : index
    %c0_21 = arith.constant 0 : index
    %18 = vector.load %arg6[%c0_20, %c0_21] : memref<8x8xf32, #tpu.memory_space<vmem>>, vector<8x8xf32>
    %cst_22 = arith.constant dense<0.000000e+00> : vector<8x128xf32>
    %19 = tpu.matmul %18, %13, %cst_22 {dimension_numbers = #tpu.dot_dimension_numbers<[1], [0], [0], [1], [0, 0, 1, 1], [], []>} : vector<8x8xf32>, vector<8x128xf32>, vector<8x128xf32> -> vector<8x128xf32>
    %c1_i32 = arith.constant 1 : i32
    %20 = arith.muli %arg1, %c1_i32 : i32
    %21 = arith.addi %20, %arg2 : i32
    %c0_i32_23 = arith.constant 0 : i32
    %22 = arith.cmpi eq, %21, %c0_i32_23 : i32
    %c16_i32 = arith.constant 16 : i32
    %c128_i32 = arith.constant 128 : i32
    %23 = arith.select %22, %c16_i32, %c128_i32 : i32
    %24 = tpu.iota {dimensions = array<i32: 1>} : vector<8x128xi32>
    %25 = vector.broadcast %23 : i32 to vector<8x128xi32>
    %26 = arith.cmpi slt, %24, %25 : vector<8x128xi32>
    %cst_24 = arith.constant 0.000000e+00 : f32
    %27 = vector.broadcast %cst_24 : f32 to vector<8x128xf32>
    %28 = arith.select %26, %17, %27 : vector<8x128xi1>, vector<8x128xf32>
    %cst_25 = arith.constant 0.000000e+00 : f32
    %29 = vector.broadcast %cst_25 : f32 to vector<8x128xf32>
    %30 = arith.select %26, %19, %29 : vector<8x128xi1>, vector<8x128xf32>
    %cst_26 = arith.constant dense<0.000000e+00> : vector<8xf32>
    %31 = vector.multi_reduction <add>, %28, %cst_26 [1] : vector<8x128xf32> to vector<8xf32>
    %32 = vector.shape_cast %31 : vector<8xf32> to vector<8x1xf32>
    %33 = arith.mulf %28, %28 : vector<8x128xf32>
    %cst_27 = arith.constant dense<0.000000e+00> : vector<8xf32>
    %34 = vector.multi_reduction <add>, %33, %cst_27 [1] : vector<8x128xf32> to vector<8xf32>
    %35 = vector.shape_cast %34 : vector<8xf32> to vector<8x1xf32>
    %cst_28 = arith.constant dense<0.000000e+00> : vector<8xf32>
    %36 = vector.multi_reduction <add>, %30, %cst_28 [1] : vector<8x128xf32> to vector<8xf32>
    %37 = vector.shape_cast %36 : vector<8xf32> to vector<8x1xf32>
    %38 = arith.mulf %30, %30 : vector<8x128xf32>
    %cst_29 = arith.constant dense<0.000000e+00> : vector<8xf32>
    %39 = vector.multi_reduction <add>, %38, %cst_29 [1] : vector<8x128xf32> to vector<8xf32>
    %40 = vector.shape_cast %39 : vector<8xf32> to vector<8x1xf32>
    %41 = tpu.concatenate %32, %35, %37, %40 in 1 : vector<8x1xf32>, vector<8x1xf32>, vector<8x1xf32>, vector<8x1xf32> -> vector<8x4xf32>
    %c0_i32_30 = arith.constant 0 : i32
    %42 = arith.cmpi eq, %arg2, %c0_i32_30 : i32
    %43 = arith.extui %42 : i1 to i32
    %c0_i32_31 = arith.constant 0 : i32
    %44 = arith.cmpi ne, %43, %c0_i32_31 : i32
    scf.if %44 {
      %cst_40 = arith.constant 0.000000e+00 : f32
      %51 = vector.broadcast %cst_40 : f32 to vector<8x4xf32>
      %c0_41 = arith.constant 0 : index
      %c0_42 = arith.constant 0 : index
      %c0_43 = arith.constant 0 : index
      %c0_44 = arith.constant 0 : index
      %52 = vector.load %arg7[%c0_41, %c0_42, %c0_43, %c0_44] : memref<1x1x8x4xf32, #tpu.memory_space<vmem>>, vector<1x1x8x4xf32>
      %53 = vector.shape_cast %52 : vector<1x1x8x4xf32> to vector<8x4xf32>
      %54 = vector.shape_cast %51 : vector<8x4xf32> to vector<1x1x8x4xf32>
      tpu.vector_store %arg7[%c0_41, %c0_42, %c0_43, %c0_44], %54 {strides = array<i32>} : memref<1x1x8x4xf32, #tpu.memory_space<vmem>>, vector<1x1x8x4xf32>,
    } else {
    }
    %c0_32 = arith.constant 0 : index
    %c0_33 = arith.constant 0 : index
    %c0_34 = arith.constant 0 : index
    %c0_35 = arith.constant 0 : index
    %45 = vector.load %arg7[%c0_32, %c0_33, %c0_34, %c0_35] : memref<1x1x8x4xf32, #tpu.memory_space<vmem>>, vector<1x1x8x4xf32>
    %46 = vector.shape_cast %45 : vector<1x1x8x4xf32> to vector<8x4xf32>
    %47 = arith.addf %46, %41 : vector<8x4xf32>
    %c0_36 = arith.constant 0 : index
    %c0_37 = arith.constant 0 : index
    %c0_38 = arith.constant 0 : index
    %c0_39 = arith.constant 0 : index
    %48 = vector.load %arg7[%c0_36, %c0_37, %c0_38, %c0_39] : memref<1x1x8x4xf32, #tpu.memory_space<vmem>>, vector<1x1x8x4xf32>
    %49 = vector.shape_cast %48 : vector<1x1x8x4xf32> to vector<8x4xf32>
    %50 = vector.shape_cast %47 : vector<8x4xf32> to vector<1x1x8x4xf32>
    tpu.vector_store %arg7[%c0_36, %c0_37, %c0_38, %c0_39], %50 {strides = array<i32>} : memref<1x1x8x4xf32, #tpu.memory_space<vmem>>, vector<1x1x8x4xf32>,
    return
  }
  func.func @transform_0(%arg0: i32, %arg1: i32, %arg2: i32) -> (i32, i32, i32) {
    %c1_i32 = arith.constant 1 : i32
    %0 = arith.muli %arg1, %c1_i32 : i32
    %1 = arith.addi %0, %arg2 : i32
    %c0_i32 = arith.constant 0 : i32
    %c0_i32_0 = arith.constant 0 : i32
    return %arg0, %c0_i32, %1 : i32, i32, i32
  }
  func.func @transform_1(%arg0: i32, %arg1: i32, %arg2: i32) -> (i32, i32, i32, i32) {
    %c1_i32 = arith.constant 1 : i32
    %0 = arith.muli %arg1, %c1_i32 : i32
    %1 = arith.addi %0, %arg2 : i32
    %c0_i32 = arith.constant 0 : i32
    %c0_i32_0 = arith.constant 0 : i32
    %c0_i32_1 = arith.constant 0 : i32
    return %arg0, %1, %c0_i32, %c0_i32_0 : i32, i32, i32, i32
  }
  func.func @transform_2(%arg0: i32, %arg1: i32, %arg2: i32) -> (i32, i32) {
    %c0_i32 = arith.constant 0 : i32
    %c0_i32_0 = arith.constant 0 : i32
    %c0_i32_1 = arith.constant 0 : i32
    return %c0_i32, %c0_i32_0 : i32, i32
  }
  func.func @transform_3(%arg0: i32, %arg1: i32, %arg2: i32) -> (i32, i32) {
    %c0_i32 = arith.constant 0 : i32
    %c0_i32_0 = arith.constant 0 : i32
    %c0_i32_1 = arith.constant 0 : i32
    return %c0_i32, %c0_i32_0 : i32, i32
  }
  func.func @transform_4(%arg0: i32, %arg1: i32, %arg2: i32) -> (i32, i32, i32, i32) {
    %c0_i32 = arith.constant 0 : i32
    %c0_i32_0 = arith.constant 0 : i32
    %c0_i32_1 = arith.constant 0 : i32
    return %arg0, %arg1, %c0_i32, %c0_i32_0 : i32, i32, i32, i32
  }
}

</mosaic_0001>

<bundles_post_ra>
// kernel: tpu_custom_call.1
= control target key start
LH: loop header
LB: loop body
LE: loop exit
PB: predicated region body
PF: predicated region fallthrough
CT: control target
= control target key end

     0   :  { %9 = vsyncpa [#allocation4], 0  ;;  %s788_s15 = smov 0   ;;  %s790_s16 = smov 0   ;;  %s870_s0 = inlined_call_operand.vmem [shape: f32[2,4,128], index: 0, kind: input, shape index: {}]   ;;  %s871_s1 = inlined_call_operand.vmem [shape: f32[2,1,4,2], index: 1, kind: input, shape index: {}]   ;;  %s872_s2 = inlined_call_operand.hbm [shape: f32[8,24], index: 2, kind: input, shape index: {}]   ;;  %s873_s3 = inlined_call_operand.vmem [shape: f32[8,8], index: 3, kind: input, shape index: {}]   ;;  %s874_s4 = inlined_call_operand.vmem [shape: f32[2,1,8,4], index: 4, kind: output, shape index: {}]  }
   0x1   :  { %s792_s17 = smov 0  }
   0x2 LB: > { %s629_s18 = sadd.s32 4294967295, %s755_s17   ;;  %s34_s19 = sadd.s32 1, %s751_s16  ;;  %s755_s17 = sphi %s792_s17, %s15_s17   ;;  %s751_s16 = sphi %s790_s16, %s878_s16   ;;  %s747_s15 = sphi %s788_s15, %s877_s15  }
   0x3   : > { %p36_p0 = scmp.ge.s32.totalorder %s34_s19, 2  ;;  %p631_p1 = scmp.ge.s32.totalorder %s755_s17, 1 }
   0x4   : > { %p169_p2 = scmp.lt.s32.totalorder %s755_s17, 3  ;;  %p813_p4 = scmp.eq.s32.totalorder %s629_s18, 0 }
   0x5   : > { %s880_s19 = smov (%p36_p0, %s34_s19), 0  ;;  %s757_s22 = smov [#allocation3]  }
   0x6   : > { %p809_p3 = pnand %p631_p1, %p169_p2  ;;  %s182_s23 = sshll.u32 %s757_s22, 4  ;;  %s183_s23 = int_to_ptr.vmem [resolvable:$true] %s182_s23 }
   0x7   : > { %s714_s24 = scalar_lea.vmem %s183_s23, 128  ;;  %p722_p11 = scmp.lt.s32.totalorder %s183_s23, %s183_s23 }
   0x8   : > { %p667_p5 = pneg %p809_p3  ;;  %p715_p8 = scmp.ne.s32.totalorder %s183_s23, %s714_s24 }
   0x9   : > { %p723_p12 = scmp.lt.s32.totalorder %s714_s24, %s714_s24 }
   0xa   : > { %p668_p6 = pnand %p813_p4, %p667_p5 }
   0xb   : > { %p724_p13 = por %p723_p12, %p722_p11 }
   0xc   : > { %p705_p7 = pneg %p668_p6 }
   0xe   : > { %p717_p9 = pnand %p715_p8, %p705_p7 }
  0x10   : > { %p718_p10 = pneg %p717_p9 }
  0x12   : > { %p725_p0 = pnand %p724_p13, %p718_p10 }
  0x14   : > { %728 = shalt.err (!%p725_p0)
}
  0x15   : > { %670 = dma.hbm_to_vmem [thread:$0]  (!%p668_p6), %s872_s2, 128, %s183_s23, [#allocation4]  }
  0x16   : > { %222 = sbr.rel (%p809_p3) target bundleno = 738 (0x2e2), region = 36 }
  0x1b   : > { %742 = dma.done.wait (%p813_p4), [#allocation4], 128  }
  0x1c   : > { %744 = vsyncadd (%p813_p4), [#allocation4], 4294967168  ;;  %p262_p1 = scmp.lt.s32.totalorder %s747_s15, 1  ;;  %v758_v0 = vmov 0.0   ;;  %s759_s8 = smov 127   ;;  %vm307_vm0 = vcmask 3072   ;;  %v494_v24 = vlaneseq }
  0x1d   : > { %291 = vst [vmem:[#allocation2 + $0x8] sm:$0xf0] %v758_v0  ;;  %290 = vst [vmem:[#allocation2] sm:$0xf0] %v758_v0  ;;  %649 = vmatprep.subr.mxu0 %v758_v0  ;;  %658 = vmatprep.subr.mxu1 %v758_v0  ;;  %s760_s9 = smov 126   ;;  %vm300_vm1 = vcmask 1044472  }
  0x1e   : > { %292 = vst [vmem:[#allocation2 + $0x10] sm:$0xf0] %v758_v0  ;;  %s882_s15 = smov (!%p262_p1, %s747_s15), 1  ;;  %s761_s10 = smov 1   ;;  %vm762_vm2 = vmmov 0   ;;  %v416_v10 = vld [vmem:[%s873_s3] sm:$0xff] }
  0x1f   : > { %s636_s27 = sshll.u32 %s882_s15, 2  ;;  %655 = vmatprep.mubr.msk.f32.mxu0 %vm762_vm2, %v758_v0  ;;  %660 = vmatprep.mubr.msk.f32.mxu1 %vm762_vm2, %v758_v0  ;;  %vm417_vm3 = vcmask 64512   ;;  %vm322_vm4 = vcmask 1031168   ;;  %vm336_vm5 = vcmask 7168   ;;  %v324_v20 = vld [vmem:[#allocation3] sm:$0xff]  ;;  %vm342_vm6 = vcmask 195584  }
  0x20   : > { %s268_s30 = scalar_lea.vmem %s870_s0, %s636_s27  ;;  %s277_s7 = scalar_lea.vmem %s871_s1, %s636_s27  ;;  %v495_v25 = vand.u32 127, %v494_v24  ;;  %vm518_vm8 = vcmask 31744   ;;  %vm511_vm9 = vcmask 15360   ;;  %vm513_vm10 = vcmask 23552  }
  0x21   : > { %v302_v1 = vld [vmem:[%s277_s7] sm:$0xf]  ;;  %s638_s13 = sshll.u32 %s882_s15, 3 }
  0x22   : > { %v293_v2 = vld [vmem:[%s268_s30] sm:$0xf]  ;;  %304 = vrot.lane.b32.xlu0 %v302_v1, %s759_s8  ;;  %vm497_vm7 = vcmp.lt.s32.totalorder %v495_v25, 16  ;;  %s285_s20 = scalar_lea.vmem %s874_s4, %s638_s13 }
  0x23   : > { %294 = vst [vmem:[#allocation2 + $0x8] sm:$0xf] %v293_v2  ;;  %v295_v3 = vld [vmem:[%s277_s7] sm:$0xf]  ;;  %519 = vst.msk [vmem:[%s285_s20] sm:$0xff] %vm518_vm8, %v758_v0 }
  0x26   : > { %297 = vrot.lane.b32.xlu0 %v295_v3, %s759_s8 }
  0x2a   : > { %v311_v4 = vld [vmem:[#allocation2 + $0x8] sm:$0xff]  ;;  %v520_v36 = vld [vmem:[%s285_s20] sm:$0xff] }
  0x2b   : > { %318 = vrot.lane.b32.xlu1 %v311_v4, %s760_s9  ;;  %314 = vrot.lane.b32.xlu0 %v311_v4, %s759_s8 }
  0x2c   : > { %659 = vmatpush3.msra.mxu1 %v311_v4 }
  0x2d   : > { %661 = vmatmul.mubr.msk.f32.vlgmr.msra.gmra.mxu1 %vm417_vm3, %v416_v10 }
  0x94   : > { %v305_v5 = vpop.permute.xlu0 %304 }
  0x95   : > { %308 = vst.msk [vmem:[#allocation2 + $0x10] sm:$0xf] %vm307_vm0, %v305_v5 }
  0x98   : > { %v298_v6 = vpop.permute.xlu0 %297 }
  0x99   : > { %301 = vst.msk [vmem:[#allocation2] sm:$0xf] %vm300_vm1, %v298_v6 }
  0x9c   : > { %v312_v7 = vld [vmem:[#allocation2 + $0x10] sm:$0xff] }
  0x9d   : > { %320 = vrot.lane.b32.xlu1 %v312_v7, %s760_s9  ;;  %v319_v8 = vpop.permute.xlu1 %318  ;;  %v315_v9 = vpop.permute.xlu0 %314 }
  0xa0   : > { %v309_v13 = vld [vmem:[#allocation2] sm:$0xff] }
  0xa1   : > { %332 = vrot.lane.b32.xlu1 %v319_v8, %s761_s10 }
  0xa5   : > { %330 = vrot.lane.b32.xlu1 %v315_v9, %s761_s10 }
  0xa9   : > { %328 = vrot.lane.b32.xlu1 %v311_v4, %s761_s10 }
  0xed   : > { %v487_v22 = vpop.f32.mrf.mxu1 }
  0xee   : > { %v499_v30 = vsel %vm497_vm7, %v487_v22, 0.0 }
  0xef   : > { %v662_v23 = vpop.f32.mrf.mxu1  ;;  %v507_v31 = vmul.f32 %v499_v30, %v499_v30 }
 0x10f   : > { %v321_v11 = vpop.permute.xlu1 %320 }
 0x110   : > { %v323_v12 = vsel %vm322_vm4, %v319_v8, %v321_v11 }
 0x111   : > { %334 = vrot.lane.b32.xlu0 %v323_v12, %s761_s10 }
 0x113   : > { %v333_v14 = vpop.permute.xlu1 %332 }
 0x115   : > { %326 = vrot.lane.b32.xlu0 %v309_v13, %s761_s10 }
 0x117   : > { %v331_v15 = vpop.permute.xlu1 %330 }
 0x11b   : > { %v329_v18 = vpop.permute.xlu1 %328 }
 0x183   : > { %v335_v16 = vpop.permute.xlu0 %334 }
 0x184   : > { %v338_v17 = vsel %vm336_vm5, %v333_v14, %v335_v16 }
 0x185   : > { %650 = vmatpush3.msra.mxu0 %v338_v17 }
 0x186   : > { %651 = vmatprep.subr.mxu0 %v758_v0 }
 0x187   : > { %652 = vmatpush3.msra.mxu0 %v331_v15  ;;  %v327_v19 = vpop.permute.xlu0 %326 }
 0x188   : > { %653 = vmatprep.subr.mxu0 %v758_v0  ;;  %v337_v21 = vsel %vm336_vm5, %v327_v19, %v329_v18 }
 0x189   : > { %654 = vmatpush3.msra.mxu0 %v337_v21 }
 0x18a   : > { %656 = vmatmul.mubr.msk.f32.vlgmr.msra.gmra.mxu0 %vm342_vm6, %v324_v20 }
 0x24a   : > { %v412_v26 = vpop.f32.mrf.mxu0 }
 0x24b   : > { %v498_v27 = vsel %vm497_vm7, %v412_v26, 0.0 }
 0x24c   : > { %500 = vadd.xlane.f32.xlu0 %v498_v27  ;;  %v657_v28 = vpop.f32.mrf.mxu0  ;;  %v502_v29 = vmul.f32 %v498_v27, %v498_v27 }
 0x24e   : > { %503 = vadd.xlane.f32.xlu1 %v502_v29 }
 0x250   : > { %505 = vadd.xlane.f32.xlu0 %v499_v30 }
 0x254   : > { %508 = vadd.xlane.f32.xlu0 %v507_v31 }
 0x2d5   : > { %v501_v32 = vpop.xlane.xlu0 %500 }
 0x2d7   : > { %v504_v33 = vpop.xlane.xlu1 %503 }
 0x2d8   : > { %v510_v35 = vsel %vm336_vm5, %v501_v32, %v504_v33 }
 0x2d9   : > { %v506_v34 = vpop.xlane.xlu0 %505 }
 0x2da   : > { %v512_v37 = vsel %vm511_vm9, %v510_v35, %v506_v34 }
 0x2dd   : > { %v509_v38 = vpop.xlane.xlu0 %508 }
 0x2de   : > { %v514_v39 = vsel %vm513_vm10, %v512_v37, %v509_v38 }
 0x2df   : > { %v521_v40 = vadd.f32 %v520_v36, %v514_v39 }
 0x2e1   : > { %523 = vst.msk [vmem:[%s285_s20] sm:$0xff] %vm518_vm8, %v521_v40 }
 0x2e2 PF: > { %s15_s17 = sadd.s32 1, %s755_s17   ;;  %s877_s15 = smov %s751_s16 }
 0x2e3   : > { %p12_p2 = scmp.ge.s32.totalorder %s15_s17, 4   ;;  %s878_s16 = smov %s880_s19 }
 0x2e5   :  { %14 = sbr.rel (!%p12_p2) target bundleno = 2 (0x2), region = 82 }
 0x2ea   :  { %549 = vsyncpa [#allocation4], 1 }
 0x2eb   :  { %551 = vsyncpa [#allocation4 + $0x1], 1 }

</bundles_post_ra>
